<compile_context>
chip_gen: v6e
topology: v6e:2x2x1
jax: 0.10.0
libtpu: 0.0.40
codegen_flags: <defaults>
</compile_context>

<pallas_src>
import jax
import jax.numpy as jnp
from jax import lax
from jax.experimental import pallas as pl
from jax.experimental.pallas import tpu as pltpu


def sigmoid_fold_kernel(scal_ref, x_ref, s_ref, st_ref, o_ref):
    """One batch tile of the SigmoidFold forward.

    scal_ref: SMEM (3,) f32     = [1/(n.n), crease, crease*(n.n)]
    x_ref:    VMEM (TB, Wp)     lane-packed input tile (Wp = W*PACK)
    s_ref:    VMEM (Wp, PACK)   block-diagonal fold matrix S (S[k*W+w, k]=n[w])
    st_ref:   VMEM (PACK, Wp)   S transposed (precomputed; avoids in-kernel xpose)
    o_ref:    VMEM (TB, Wp)     output tile
    """
    x = x_ref[...]                                    # (TB, Wp) f32
    st = st_ref[...]                                  # (PACK, Wp)

    inv_nn = scal_ref[0]                              # 1 / (n . n)
    crease = scal_ref[1]
    crease_nn = scal_ref[2]                           # crease * (n . n)

    pack = st_ref.shape[0]
    if pack == 1:
        # Unpacked fallback: plain lane reduction (st row == n).
        dots = jnp.sum(x * st, axis=-1, keepdims=True)            # (TB, 1)
    else:
        # MXU: the 4 per-original-row dots z.n per packed row.
        dots = jnp.dot(x, s_ref[...],
                       preferred_element_type=jnp.float32,
                       precision=lax.Precision.HIGHEST)           # (TB, PACK)

    # sigmoid(crease * (z.n - n.n)) as a single EUP tanh (== 1/(1+exp(-p))).
    p = crease * dots - crease_nn                                  # (TB, PACK)
    sig = 0.5 * (jnp.tanh(0.5 * p) + 1.0)

    # Fused fold coefficient: 2*sig*(1 - scales).
    coeff = 2.0 * sig * (1.0 - dots * inv_nn)                      # (TB, PACK)

    if pack == 1:
        delta = coeff * st                                         # (TB, Wp)
    else:
        # MXU: broadcast coeff back onto each W-lane segment of n.
        delta = jnp.dot(coeff, st,
                        preferred_element_type=jnp.float32,
                        precision=lax.Precision.HIGHEST)           # (TB, Wp)

    o_ref[...] = (x + delta).astype(o_ref.dtype)


def _pick_block_rows(rows, lane_width, target_block_bytes):
    """Rows per grid block: ~target_block_bytes of f32 input, multiple of 8.

    If the whole (packed) batch fits in one block, split it into >= 2 grid
    steps anyway so the second TensorCore (v7x megacore) gets work.
    """
    tb = max(8, target_block_bytes // (lane_width * 4))
    tb = (tb // 8) * 8
    if tb >= rows:
        if rows > 8:
            tb = ((pl.cdiv(rows, 2) + 7) // 8) * 8
            if tb >= rows:                 # safety net: fall back to one block
                tb = rows
        else:
            tb = rows
    return int(min(tb, rows))


def sigmoid_fold(x, n, crease, *, target_block_bytes=2 << 20):
    """x: (B, W) f32, n: (W,) f32, crease: scalar. Returns (B, W) f32."""
    x = jnp.asarray(x, jnp.float32)
    n = jnp.asarray(n, jnp.float32)
    crease = jnp.asarray(crease, jnp.float32)
    B, W = x.shape

    # PyTorch parity: guard against a zero normal vector.
    n = jnp.where(jnp.linalg.norm(n) == 0.0, n + 1e-8, n)

    # Lane packing: fold `pack` consecutive rows into one 128-lane row.
    # The reshape of a contiguous (B, W) array is a free view (no HBM pass).
    pack = 1
    if W < 128 and 128 % W == 0 and B % (128 // W) == 0:
        pack = 128 // W
    wp = W * pack
    bp = B // pack
    xp = x.reshape(bp, wp)

    # Hoist all per-call scalar work out of the kernel.
    n_dot_n = jnp.sum(n * n)
    scalars = jnp.stack(
        [1.0 / n_dot_n, crease, crease * n_dot_n]).astype(jnp.float32)  # (3,)

    # Block-diagonal fold matrix S (Wp, PACK): S[k*W + w, k] = n[w].
    eye = jnp.eye(pack, dtype=jnp.float32)
    S = (eye[:, None, :] * n[None, :, None]).reshape(wp, pack)
    St = S.T                                                         # (PACK, Wp)

    tb = _pick_block_rows(bp, wp, target_block_bytes)
    grid = (pl.cdiv(bp, tb),)   # ragged last block is masked by Pallas (no pad)

    out = pl.pallas_call(
        sigmoid_fold_kernel,
        out_shape=jax.ShapeDtypeStruct((bp, wp), jnp.float32),
        grid_spec=pltpu.PrefetchScalarGridSpec(
            num_scalar_prefetch=0,
            grid=grid,
            in_specs=[
                # Tiny scalar pack lives in SMEM.
                pl.BlockSpec(memory_space=pltpu.MemorySpace.SMEM),
                # Batch-tiled, lane-dense input: streams through VMEM.
                pl.BlockSpec((tb, wp), lambda i: (i, 0)),
                # Fold matrices: small, VMEM-resident across all tiles.
                pl.BlockSpec((wp, pack), lambda i: (0, 0)),
                pl.BlockSpec((pack, wp), lambda i: (0, 0)),
            ],
            out_specs=pl.BlockSpec((tb, wp), lambda i: (i, 0)),
        ),
        compiler_params=pltpu.CompilerParams(
            # Batch tiles are independent -> shard across TCs on v7x,
            # harmless on v5e/v6e.
            dimension_semantics=("parallel",)),
    )(scalars, xp, S, St)

    return out.reshape(B, W)


def sigmoid_fold_reference(x, n, crease):
    """Pure-JAX reference mirroring the PyTorch forward (f32 throughout)."""
    n = jnp.where(jnp.linalg.norm(n) == 0.0, n + 1e-8, n)
    z_dot_x = jnp.dot(x, n, precision=lax.Precision.HIGHEST)        # (B,)
    n_dot_n = jnp.sum(n * n)
    scales = z_dot_x / n_dot_n
    p = crease * (z_dot_x - n_dot_n)
    sigmoid = 1.0 / (1.0 + jnp.exp(-p))
    ortho_proj = (1.0 - scales)[:, None] * n[None, :]
    return x + 2.0 * sigmoid[:, None] * ortho_proj


if __name__ == "__main__":
    # Small shapes consistent with the module: (batch, width) dense input.
    B, W = 256, 32      # B % 4 == 0 -> lane-packed (64, 128) path, grid=(2,)
    crease = 1.0        # default: nn.Parameter(torch.tensor(1.0))

    key = jax.random.PRNGKey(0)
    k_x, k_n = jax.random.split(key, 2)

    x = jax.random.normal(k_x, (B, W), dtype=jnp.float32)
    # n init in the module: torch.randn(width) * (2 / width) ** 0.5
    n = jax.random.normal(k_n, (W,), dtype=jnp.float32) * (2.0 / W) ** 0.5

    # TODO(synk): lazy creation of self.n inside forward() has no in-kernel
    # equivalent; the normal vector is materialized host-side and passed in.

    fold = jax.jit(sigmoid_fold)
    out = jax.block_until_ready(fold(x, n, crease))
    ref = sigmoid_fold_reference(x, n, crease)
    assert out.shape == (B, W)
    assert jnp.allclose(out, ref, rtol=1e-4, atol=1e-4), "mismatch vs reference"

    # Also exercise the unpacked + ragged-last-block path (B not a multiple of 4).
    B2 = 13
    x2 = jax.random.normal(k_x, (B2, W), dtype=jnp.float32)
    out2 = jax.block_until_ready(jax.jit(sigmoid_fold)(x2, n, crease))
    ref2 = sigmoid_fold_reference(x2, n, crease)
    assert out2.shape == (B2, W)
    assert jnp.allclose(out2, ref2, rtol=1e-4, atol=1e-4), "ragged-path mismatch"

    print("KERNEL_OK")
</pallas_src>

<mosaic_0001>
module attributes {stable_mosaic.version = 11 : i64} {
  func.func @sigmoid_fold_kernel(%arg0: i32, %arg1: memref<3xf32, #tpu.memory_space<smem>>, %arg2: memref<32x128xf32, #tpu.memory_space<vmem>>, %arg3: memref<128x4xf32, #tpu.memory_space<vmem>>, %arg4: memref<4x128xf32, #tpu.memory_space<vmem>>, %arg5: memref<32x128xf32, #tpu.memory_space<vmem>>) attributes {dimension_semantics = [#tpu.dimension_semantics<parallel>], iteration_bounds = array<i64: 2>, scalar_prefetch = 0 : i64, scratch_operands = 0 : i64, tpu.core_type = #tpu.core_type<tc>, window_params = [{transform_indices = @transform_0, window_bounds = array<i64: 3>}, {transform_indices = @transform_1, window_bounds = array<i64: 32, 128>}, {pipeline_mode = #tpu.pipeline_mode<synchronous>, transform_indices = @transform_2, window_bounds = array<i64: 128, 4>}, {pipeline_mode = #tpu.pipeline_mode<synchronous>, transform_indices = @transform_3, window_bounds = array<i64: 4, 128>}, {transform_indices = @transform_4, window_bounds = array<i64: 32, 128>}]} {
    %c0 = arith.constant 0 : index
    %c0_0 = arith.constant 0 : index
    %0 = vector.load %arg2[%c0, %c0_0] : memref<32x128xf32, #tpu.memory_space<vmem>>, vector<32x128xf32>
    %c0_1 = arith.constant 0 : index
    %c0_2 = arith.constant 0 : index
    %1 = vector.load %arg4[%c0_1, %c0_2] : memref<4x128xf32, #tpu.memory_space<vmem>>, vector<4x128xf32>
    %c0_3 = arith.constant 0 : index
    %2 = memref.load %arg1[%c0_3] : memref<3xf32, #tpu.memory_space<smem>>
    %c1 = arith.constant 1 : index
    %3 = memref.load %arg1[%c1] : memref<3xf32, #tpu.memory_space<smem>>
    %c2 = arith.constant 2 : index
    %4 = memref.load %arg1[%c2] : memref<3xf32, #tpu.memory_space<smem>>
    %c0_4 = arith.constant 0 : index
    %c0_5 = arith.constant 0 : index
    %5 = vector.load %arg3[%c0_4, %c0_5] : memref<128x4xf32, #tpu.memory_space<vmem>>, vector<128x4xf32>
    %cst = arith.constant dense<0.000000e+00> : vector<32x4xf32>
    %6 = tpu.matmul %0, %5, %cst {dimension_numbers = #tpu.dot_dimension_numbers<[1], [0], [0], [1], [0, 0, 1, 1], [], []>, precision = #tpu.contract_precision<fp32>} : vector<32x128xf32>, vector<128x4xf32>, vector<32x4xf32> -> vector<32x4xf32>
    %7 = vector.broadcast %3 : f32 to vector<32x4xf32>
    %8 = arith.mulf %7, %6 : vector<32x4xf32>
    %9 = vector.broadcast %4 : f32 to vector<32x4xf32>
    %10 = arith.subf %8, %9 : vector<32x4xf32>
    %cst_6 = arith.constant 5.000000e-01 : f32
    %11 = vector.broadcast %cst_6 : f32 to vector<32x4xf32>
    %12 = arith.mulf %11, %10 : vector<32x4xf32>
    %13 = math.tanh %12 : vector<32x4xf32>
    %cst_7 = arith.constant 1.000000e+00 : f32
    %14 = vector.broadcast %cst_7 : f32 to vector<32x4xf32>
    %15 = arith.addf %13, %14 : vector<32x4xf32>
    %cst_8 = arith.constant 5.000000e-01 : f32
    %16 = vector.broadcast %cst_8 : f32 to vector<32x4xf32>
    %17 = arith.mulf %16, %15 : vector<32x4xf32>
    %cst_9 = arith.constant 2.000000e+00 : f32
    %18 = vector.broadcast %cst_9 : f32 to vector<32x4xf32>
    %19 = arith.mulf %18, %17 : vector<32x4xf32>
    %20 = vector.broadcast %2 : f32 to vector<32x4xf32>
    %21 = arith.mulf %6, %20 : vector<32x4xf32>
    %cst_10 = arith.constant 1.000000e+00 : f32
    %22 = vector.broadcast %cst_10 : f32 to vector<32x4xf32>
    %23 = arith.subf %22, %21 : vector<32x4xf32>
    %24 = arith.mulf %19, %23 : vector<32x4xf32>
    %cst_11 = arith.constant dense<0.000000e+00> : vector<32x128xf32>
    %25 = tpu.matmul %24, %1, %cst_11 {dimension_numbers = #tpu.dot_dimension_numbers<[1], [0], [0], [1], [0, 0, 1, 1], [], []>, precision = #tpu.contract_precision<fp32>} : vector<32x4xf32>, vector<4x128xf32>, vector<32x128xf32> -> vector<32x128xf32>
    %26 = arith.addf %0, %25 : vector<32x128xf32>
    %c0_12 = arith.constant 0 : index
    %c0_13 = arith.constant 0 : index
    %27 = vector.load %arg5[%c0_12, %c0_13] : memref<32x128xf32, #tpu.memory_space<vmem>>, vector<32x128xf32>
    tpu.vector_store %arg5[%c0_12, %c0_13], %26 {strides = array<i32>} : memref<32x128xf32, #tpu.memory_space<vmem>>, vector<32x128xf32>,
    return
  }
  func.func @transform_0(%arg0: i32) -> i32 {
    %c0_i32 = arith.constant 0 : i32
    %c0_i32_0 = arith.constant 0 : i32
    return %c0_i32 : i32
  }
  func.func @transform_1(%arg0: i32) -> (i32, i32) {
    %c0_i32 = arith.constant 0 : i32
    %c0_i32_0 = arith.constant 0 : i32
    return %arg0, %c0_i32 : i32, i32
  }
  func.func @transform_2(%arg0: i32) -> (i32, i32) {
    %c0_i32 = arith.constant 0 : i32
    %c0_i32_0 = arith.constant 0 : i32
    %c0_i32_1 = arith.constant 0 : i32
    return %c0_i32, %c0_i32_0 : i32, i32
  }
  func.func @transform_3(%arg0: i32) -> (i32, i32) {
    %c0_i32 = arith.constant 0 : i32
    %c0_i32_0 = arith.constant 0 : i32
    %c0_i32_1 = arith.constant 0 : i32
    return %c0_i32, %c0_i32_0 : i32, i32
  }
  func.func @transform_4(%arg0: i32) -> (i32, i32) {
    %c0_i32 = arith.constant 0 : i32
    %c0_i32_0 = arith.constant 0 : i32
    return %arg0, %c0_i32 : i32, i32
  }
}

</mosaic_0001>

<bundles_post_ra>
// kernel: sigmoid_fold.1
= control target key start
LH: loop header
LB: loop body
LE: loop exit
PB: predicated region body
PF: predicated region fallthrough
CT: control target
= control target key end

     0   :  { %9 = vsyncpa [#allocation3], 0  ;;  %s2241_s15 = smov 0   ;;  %s2767_s0 = inlined_call_operand.vmem [shape: f32[3], index: 0, kind: input, shape index: {}]   ;;  %s2768_s1 = inlined_call_operand.vmem [shape: f32[64,128], index: 1, kind: input, shape index: {}]   ;;  %s2769_s2 = inlined_call_operand.vmem [shape: f32[128,4], index: 2, kind: input, shape index: {}]   ;;  %s2770_s3 = inlined_call_operand.vmem [shape: f32[4,128], index: 3, kind: input, shape index: {}]   ;;  %s2771_s4 = inlined_call_operand.vmem [shape: f32[64,128], index: 4, kind: output, shape index: {}]  }
   0x1 LB: > { %s1720_s16 = sadd.s32 4294967295, %s2213_s15   ;;  %p1722_p0 = scmp.ge.s32.totalorder %s2213_s15, 1  ;;  %s2213_s15 = sphi %s2241_s15, %s15_s15  }
   0x2   : > { %p135_p1 = scmp.lt.s32.totalorder %s2213_s15, 3  ;;  %s148_s19 = sshll.u32 %s2767_s0, 4  ;;  %s149_s19 = int_to_ptr.vmem [resolvable:$true] %s148_s19 }
   0x3   : > { %p2256_p3 = scmp.eq.s32.totalorder %s1720_s16, 0  ;;  %s2188_s22 = scalar_lea.vmem %s149_s19, 16 }
   0x4   : > { %p2252_p2 = pnand %p1722_p0, %p135_p1  ;;  %p2189_p6 = scmp.ne.s32.totalorder %s149_s19, %s2188_s22 }
   0x5   : > { %p2196_p10 = scmp.lt.s32.totalorder %s149_s19, %s149_s19  ;;  %p2197_p11 = scmp.lt.s32.totalorder %s2188_s22, %s2188_s22 }
   0x6   : > { %p2165_p4 = pneg %p2252_p2 }
   0x7   : > { %p2198_p12 = por %p2197_p11, %p2196_p10 }
   0x8   : > { %p2166_p5 = pnand %p2256_p3, %p2165_p4 }
   0xa   : > { %p2190_p7 = pneg %p2166_p5 }
   0xc   : > { %p2191_p8 = pnand %p2190_p7, %p2189_p6 }
   0xe   : > { %p2192_p9 = pneg %p2191_p8 }
  0x10   : > { %p2199_p13 = pnand %p2198_p12, %p2192_p9 }
  0x12   : > { %2202 = shalt.err (!%p2199_p13)
}
  0x13   : > { %s2215_s23 = smov [#allocation2]   ;;  %176 = sbr.rel (%p2252_p2) target bundleno = 602 (0x25a), region = 36 }
  0x14   : > { %2168 = dma.vmem_to_smem (!%p2166_p5), %s149_s19, 16, %s2215_s23, [#allocation3]  }
  0x18   : > { %2208 = dma.done.wait (%p2256_p3), [#allocation3], 16  }
  0x19   : > { %2210 = vsyncadd (%p2256_p3), [#allocation3], 4294967280 }
  0x1a   : > { %182 = sfence }
  0x1b   : > { %v238_v0 = vld [vmem:[%s2769_s2 + $0x78] sm:$0xff]  ;;  %v237_v1 = vld [vmem:[%s2769_s2 + $0x70] sm:$0xff]  ;;  %v236_v2 = vld [vmem:[%s2769_s2 + $0x68] sm:$0xff]  ;;  %s1727_s30 = sshll.u32 %s1720_s16, 2  ;;  %vm1065_vm0 = vcmask 1043456   ;;  %s1731_s13 = sld [smem:[#allocation2 + $0x1]] }
  0x1c   : > { %v2279_v3 = vand.u32 4294901760, %v238_v0  ;;  %v2281_v4 = vand.u32 4294901760, %v237_v1  ;;  %v2283_v5 = vand.u32 4294901760, %v236_v2  ;;  %v235_v6 = vld [vmem:[%s2769_s2 + $0x60] sm:$0xff]  ;;  %v234_v7 = vld [vmem:[%s2769_s2 + $0x58] sm:$0xff]  ;;  %v233_v8 = vld [vmem:[%s2769_s2 + $0x50] sm:$0xff] }
  0x1d   : > { %v2294_v9 = vand.u32 4294901760, %v235_v6  ;;  %v2296_v10 = vand.u32 4294901760, %v234_v7  ;;  %v2298_v11 = vand.u32 4294901760, %v233_v8  ;;  %v232_v12 = vld [vmem:[%s2769_s2 + $0x48] sm:$0xff]  ;;  %v231_v13 = vld [vmem:[%s2769_s2 + $0x40] sm:$0xff]  ;;  %v230_v18 = vld [vmem:[%s2769_s2 + $0x38] sm:$0xff] }
  0x1e   : > { %1885 = vmatprep.subr.mxu0 %v2279_v3  ;;  %v2308_v14 = vsub.f32 %v238_v0, %v2279_v3  ;;  %v2311_v15 = vsub.f32 %v237_v1, %v2281_v4  ;;  %v2313_v16 = vand.u32 4294901760, %v232_v12  ;;  %v2316_v17 = vsub.f32 %v236_v2, %v2283_v5  ;;  %p204_p0 = scmp.lt.s32.totalorder %s1727_s30, 7  ;;  %v229_v25 = vld [vmem:[%s2769_s2 + $0x30] sm:$0xff]  ;;  %v228_v35 = vld [vmem:[%s2769_s2 + $0x28] sm:$0xff]  ;;  %v227_v40 = vld [vmem:[%s2769_s2 + $0x20] sm:$0xff]  ;;  %s1732_s14 = sld [smem:[#allocation2 + $0x2]] }
  0x1f   : > { %1886 = vmatpush3.msra.mxu0 %v2279_v3  ;;  %v2323_v19 = vsub.f32 %v235_v6, %v2294_v9  ;;  %v2326_v20 = vsub.f32 %v234_v7, %v2296_v10  ;;  %v2338_v24 = vand.u32 4294901760, %v231_v13  ;;  %v2349_v27 = vand.u32 4294901760, %v230_v18  ;;  %v226_v48 = vld [vmem:[%s2769_s2 + $0x18] sm:$0xff]  ;;  %v225_v59 = vld [vmem:[%s2769_s2 + $0x10] sm:$0xff]  ;;  %v224_v2 = vld [vmem:[%s2769_s2 + $0x8] sm:$0xff]  ;;  %s220_s16 = sld [smem:[#allocation2]] }
  0x20   : > { %1887 = vmatprep.subr.mxu0 %v2281_v4  ;;  %v2330_v21 = vand.u32 4294901760, %v2308_v14  ;;  %v2333_v22 = vand.u32 4294901760, %v2311_v15  ;;  %v2336_v23 = vand.u32 4294901760, %v2316_v17  ;;  %s2785_s30 = smov (!%p204_p0, %s1727_s30), 7  ;;  %v2355_v29 = vsub.f32 %v233_v8, %v2298_v11 }
  0x21   : > { %1888 = vmatpush3.msra.mxu0 %v2281_v4  ;;  %v2347_v26 = vand.u32 4294901760, %v2323_v19  ;;  %v2352_v28 = vand.u32 4294901760, %v2326_v20  ;;  %v2365_v33 = vsub.f32 %v232_v12, %v2313_v16  ;;  %s1728_s20 = sshll.u32 %s2785_s30, 3  ;;  %v2369_v34 = vand.u32 4294901760, %v229_v25 }
  0x22   : > { %1889 = vmatprep.subr.mxu0 %v2283_v5  ;;  %v364_v30 = vsub.f32 %v2308_v14, %v2330_v21  ;;  %v371_v31 = vsub.f32 %v2311_v15, %v2333_v22  ;;  %v378_v32 = vsub.f32 %v2316_v17, %v2336_v23  ;;  %v2378_v39 = vand.u32 4294901760, %v2355_v29  ;;  %s2388_s27 = scalar_lea.vmem %s2768_s1, %s1728_s20  ;;  %s213_s19 = scalar_lea.vmem %s2771_s4, %s1728_s20 }
  0x23   : > { %1890 = vmatpush3.msra.mxu0 %v2283_v5  ;;  %v385_v38 = vsub.f32 %v2323_v19, %v2347_v26  ;;  %v392_v41 = vsub.f32 %v2326_v20, %v2352_v28  ;;  %v2394_v42 = vand.u32 4294901760, %v2365_v33  ;;  %v2397_v43 = vsub.f32 %v231_v13, %v2338_v24  ;;  %v2412_v49 = vld [vmem:[%s2388_s27] sm:$0xff]  ;;  %v2424_v54 = vld [vmem:[%s2388_s27 + $0x8] sm:$0xff] }
  0x24   : > { %1891 = vmatprep.subr.mxu0 %v2294_v9  ;;  %v365_v36 = vand.u32 4294901760, %v364_v30  ;;  %v372_v37 = vand.u32 4294901760, %v371_v31  ;;  %v379_v44 = vand.u32 4294901760, %v378_v32  ;;  %v2400_v45 = vand.u32 4294901760, %v228_v35  ;;  %2778 = vst [vmem:[#allocation5_spill] sm:$0xff] %v2412_v49  ;;  %2779 = vst [vmem:[#allocation6_spill] sm:$0xff] %v2424_v54 }
  0x25   : > { %1892 = vmatpush3.msra.mxu0 %v2294_v9  ;;  %v2403_v46 = vsub.f32 %v230_v18, %v2349_v27  ;;  %v2406_v47 = vand.u32 4294901760, %v227_v40  ;;  %v386_v50 = vand.u32 4294901760, %v385_v38  ;;  %v399_v51 = vsub.f32 %v2355_v29, %v2378_v39  ;;  %v223_v18 = vld [vmem:[%s2769_s2] sm:$0xff] }
  0x26   : > { %1893 = vmatprep.subr.mxu0 %v2296_v10  ;;  %1923 = vmatprep.subr.mxu1 %v365_v36  ;;  %v2418_v52 = vand.u32 4294901760, %v2397_v43  ;;  %v2421_v53 = vsub.f32 %v229_v25, %v2369_v34  ;;  %v393_v55 = vand.u32 4294901760, %v392_v41  ;;  %v406_v56 = vsub.f32 %v2365_v33, %v2394_v42 }
  0x27   : > { %1894 = vmatpush3.msra.mxu0 %v2296_v10  ;;  %1924 = vmatpush3.msra.mxu1 %v365_v36  ;;  %v2430_v57 = vand.u32 4294901760, %v226_v48  ;;  %v2433_v58 = vand.u32 4294901760, %v2403_v46  ;;  %v2439_v60 = vsub.f32 %v228_v35, %v2400_v45  ;;  %v2442_v61 = vand.u32 4294901760, %v2412_v49 }
  0x28   : > { %1895 = vmatprep.subr.mxu0 %v2298_v11  ;;  %1925 = vmatprep.subr.mxu1 %v372_v37  ;;  %v2446_v62 = vand.u32 4294901760, %v2424_v54  ;;  %v400_v63 = vand.u32 4294901760, %v399_v51  ;;  %v413_v0 = vsub.f32 %v2397_v43, %v2418_v52  ;;  %v2452_v1 = vand.u32 4294901760, %v2421_v53 }
  0x29   : > { %1896 = vmatpush3.msra.mxu0 %v2298_v11  ;;  %1926 = vmatpush3.msra.mxu1 %v372_v37  ;;  %v2458_v6 = vsub.f32 %v227_v40, %v2406_v47  ;;  %v407_v7 = vand.u32 4294901760, %v406_v56  ;;  %v2461_v8 = vand.u32 4294901760, %v225_v59  ;;  %v420_v12 = vsub.f32 %v2403_v46, %v2433_v58 }
  0x2a   : > { %1897 = vmatprep.subr.mxu0 %v2313_v16  ;;  %1927 = vmatprep.subr.mxu1 %v379_v44  ;;  %v2467_v13 = vand.u32 4294901760, %v2439_v60  ;;  %v2474_v25 = vsub.f32 %v2412_v49, %v2442_v61  ;;  %v2477_v30 = vsub.f32 %v226_v48, %v2430_v57  ;;  %v2480_v31 = vand.u32 4294901760, %v224_v2 }
  0x2b   : > { %1898 = vmatpush3.msra.mxu0 %v2313_v16  ;;  %1928 = vmatpush3.msra.mxu1 %v379_v44  ;;  %v2484_v32 = vsub.f32 %v2424_v54, %v2446_v62  ;;  %v414_v35 = vand.u32 4294901760, %v413_v0  ;;  %v427_v36 = vsub.f32 %v2421_v53, %v2452_v1  ;;  %v2490_v37 = vand.u32 4294901760, %v2458_v6 }
  0x2c   : > { %1899 = vmatprep.subr.mxu0 %v2338_v24  ;;  %1929 = vmatprep.subr.mxu1 %v386_v50  ;;  %v2493_v38 = vand.u32 4294901760, %v223_v18  ;;  %v2496_v40 = vsub.f32 %v225_v59, %v2461_v8  ;;  %v421_v41 = vand.u32 4294901760, %v420_v12  ;;  %v434_v44 = vsub.f32 %v2439_v60, %v2467_v13 }
  0x2d   : > { %1900 = vmatpush3.msra.mxu0 %v2338_v24  ;;  %1930 = vmatpush3.msra.mxu1 %v386_v50  ;;  %v2772_v48 = vand.u32 4294901760, %v2474_v25  ;;  %v2503_v50 = vand.u32 4294901760, %v2477_v30  ;;  %v2773_v51 = vand.u32 4294901760, %v2484_v32  ;;  %v428_v56 = vand.u32 4294901760, %v427_v36 }
  0x2e   : > { %1901 = vmatprep.subr.mxu0 %v2349_v27  ;;  %1931 = vmatprep.subr.mxu1 %v393_v55  ;;  %v441_v59 = vsub.f32 %v2458_v6, %v2490_v37  ;;  %v2518_v0 = vsub.f32 %v223_v18, %v2493_v38  ;;  %vm1052_vm1 = vcmask 31744  }
  0x2f   : > { %1902 = vmatpush3.msra.mxu0 %v2349_v27  ;;  %1932 = vmatpush3.msra.mxu1 %v393_v55  ;;  %v2508_v55 = vsub.f32 %v224_v2, %v2480_v31  ;;  %v435_v2 = vand.u32 4294901760, %v434_v44  ;;  %v448_v12 = vsub.f32 %v2477_v30, %v2503_v50 }
  0x30   : > { %1903 = vmatprep.subr.mxu0 %v2369_v34  ;;  %1933 = vmatprep.subr.mxu1 %v400_v63  ;;  %v442_v36 = vand.u32 4294901760, %v441_v59 }
  0x31   : > { %1904 = vmatpush3.msra.mxu0 %v2369_v34  ;;  %1934 = vmatpush3.msra.mxu1 %v400_v63  ;;  %v2515_v63 = vand.u32 4294901760, %v2496_v40  ;;  %v2531_v18 = vand.u32 4294901760, %v2508_v55 }
  0x32   : > { %1905 = vmatprep.subr.mxu0 %v2400_v45  ;;  %1935 = vmatprep.subr.mxu1 %v407_v7 }
  0x33   : > { %1906 = vmatpush3.msra.mxu0 %v2400_v45  ;;  %1936 = vmatpush3.msra.mxu1 %v407_v7  ;;  %v323_v7 = vsub.f32 %v2474_v25, %v2772_v48  ;;  %v455_v44 = vsub.f32 %v2496_v40, %v2515_v63  ;;  %v2538_v48 = vand.u32 4294901760, %v2518_v0  ;;  %v462_v59 = vsub.f32 %v2508_v55, %v2531_v18 }
  0x34   : > { %1907 = vmatprep.subr.mxu0 %v2406_v47  ;;  %1937 = vmatprep.subr.mxu1 %v414_v35 }
  0x35   : > { %1908 = vmatpush3.msra.mxu0 %v2406_v47  ;;  %1938 = vmatpush3.msra.mxu1 %v414_v35  ;;  %v333_v35 = vsub.f32 %v2484_v32, %v2773_v51  ;;  %v449_v51 = vand.u32 4294901760, %v448_v12  ;;  %v469_v49 = vsub.f32 %v2518_v0, %v2538_v48  ;;  %v2555_v12 = vld [vmem:[%s2388_s27 + $0x10] sm:$0xff] }
  0x36   : > { %1909 = vmatprep.subr.mxu0 %v2430_v57  ;;  %1939 = vmatprep.subr.mxu1 %v421_v41 }
  0x37   : > { %1910 = vmatpush3.msra.mxu0 %v2430_v57  ;;  %1940 = vmatpush3.msra.mxu1 %v421_v41  ;;  %v324_v41 = vand.u32 4294901760, %v323_v7  ;;  %v334_v54 = vand.u32 4294901760, %v333_v35  ;;  %v470_v7 = vand.u32 4294901760, %v469_v49 }
  0x38   : > { %1911 = vmatprep.subr.mxu0 %v2461_v8  ;;  %1941 = vmatprep.subr.mxu1 %v428_v56 }
  0x39   : > { %1912 = vmatpush3.msra.mxu0 %v2461_v8  ;;  %1942 = vmatpush3.msra.mxu1 %v428_v56  ;;  %v456_v56 = vand.u32 4294901760, %v455_v44 }
  0x3a   : > { %1913 = vmatprep.subr.mxu0 %v2480_v31  ;;  %1943 = vmatprep.subr.mxu1 %v435_v2 }
  0x3b   : > { %1914 = vmatpush3.msra.mxu0 %v2480_v31  ;;  %1944 = vmatpush3.msra.mxu1 %v435_v2  ;;  %v463_v2 = vand.u32 4294901760, %v462_v59 }
  0x3c   : > { %1915 = vmatprep.subr.mxu0 %v2493_v38  ;;  %1945 = vmatprep.subr.mxu1 %v442_v36 }
  0x3d   : > { %1916 = vmatpush3.msra.mxu0 %v2493_v38  ;;  %1946 = vmatpush3.msra.mxu1 %v442_v36  ;;  %v1014_v36 = vstv %s1732_s14 }
  0x3e   : > { %1917 = vmatprep.mubr.f32.mxu0 %v324_v41  ;;  %1947 = vmatprep.subr.mxu1 %v449_v51 }
  0x3f   : > { %1961 = vmatprep.subr.mxu0 %v2308_v14  ;;  %1918 = vmatmul.mubr.f32.vlgmr.msra.gmra.mxu0 %v334_v54  ;;  %v2559_v54 = vld [vmem:[%s2388_s27 + $0x18] sm:$0xff] }
  0x40   : > { %1948 = vmatpush3.msra.mxu1 %v449_v51  ;;  %1962 = vmatpush3.msra.mxu0 %v2308_v14  ;;  %v2565_v14 = vand.u32 4294901760, %v2555_v12  ;;  %v1009_v51 = vstv %s1731_s13 }
  0x41   : > { %1949 = vmatprep.subr.mxu1 %v456_v56  ;;  %1963 = vmatprep.subr.mxu0 %v2311_v15 }
  0x42   : > { %1950 = vmatpush3.msra.mxu1 %v456_v56  ;;  %1964 = vmatpush3.msra.mxu0 %v2311_v15  ;;  %v2570_v15 = vand.u32 4294901760, %v2559_v54 }
  0x43   : > { %1951 = vmatprep.subr.mxu1 %v463_v2  ;;  %1965 = vmatprep.subr.mxu0 %v2316_v17 }
  0x44   : > { %1952 = vmatpush3.msra.mxu1 %v463_v2  ;;  %1966 = vmatpush3.msra.mxu0 %v2316_v17  ;;  %v2580_v17 = vsub.f32 %v2555_v12, %v2565_v14 }
  0x45   : > { %1953 = vmatprep.subr.mxu1 %v470_v7  ;;  %1967 = vmatprep.subr.mxu0 %v2323_v19 }
  0x46   : > { %1954 = vmatpush3.msra.mxu1 %v470_v7  ;;  %1955 = vmatprep.mubr.f32.mxu1 %v2442_v61 }
  0x47   : > { %1968 = vmatpush3.msra.mxu0 %v2323_v19  ;;  %1956 = vmatmul.mubr.f32.vlgmr.msra.gmra.mxu1 %v2446_v62  ;;  %v2586_v19 = vsub.f32 %v2559_v54, %v2570_v15 }
  0x48   : > { %1969 = vmatprep.subr.mxu0 %v2326_v20  ;;  %1999 = vmatprep.subr.mxu1 %v2279_v3 }
  0x49   : > { %1970 = vmatpush3.msra.mxu0 %v2326_v20  ;;  %2000 = vmatpush3.msra.mxu1 %v2279_v3  ;;  %v342_v20 = vand.u32 4294901760, %v2580_v17 }
  0x4a   : > { %1971 = vmatprep.subr.mxu0 %v2355_v29  ;;  %2001 = vmatprep.subr.mxu1 %v2281_v4 }
  0x4b   : > { %1972 = vmatpush3.msra.mxu0 %v2355_v29  ;;  %2002 = vmatpush3.msra.mxu1 %v2281_v4  ;;  %v352_v29 = vand.u32 4294901760, %v2586_v19 }
  0x4c   : > { %1973 = vmatprep.subr.mxu0 %v2365_v33  ;;  %2003 = vmatprep.subr.mxu1 %v2283_v5 }
  0x4d   : > { %1974 = vmatpush3.msra.mxu0 %v2365_v33  ;;  %2004 = vmatpush3.msra.mxu1 %v2283_v5  ;;  %v343_v33 = vsub.f32 %v2580_v17, %v342_v20 }
  0x4e   : > { %1975 = vmatprep.subr.mxu0 %v2397_v43  ;;  %2005 = vmatprep.subr.mxu1 %v2294_v9 }
  0x4f   : > { %1976 = vmatpush3.msra.mxu0 %v2397_v43  ;;  %2006 = vmatpush3.msra.mxu1 %v2294_v9  ;;  %v353_v43 = vsub.f32 %v2586_v19, %v352_v29 }
  0x50   : > { %1977 = vmatprep.subr.mxu0 %v2403_v46  ;;  %2007 = vmatprep.subr.mxu1 %v2296_v10 }
  0x51   : > { %1978 = vmatpush3.msra.mxu0 %v2403_v46  ;;  %2008 = vmatpush3.msra.mxu1 %v2296_v10  ;;  %v344_v46 = vand.u32 4294901760, %v343_v33  ;;  %v354_v49 = vand.u32 4294901760, %v353_v43 }
  0x52   : > { %1979 = vmatprep.subr.mxu0 %v2421_v53  ;;  %2009 = vmatprep.subr.mxu1 %v2298_v11 }
  0x53   : > { %1980 = vmatpush3.msra.mxu0 %v2421_v53  ;;  %2010 = vmatpush3.msra.mxu1 %v2298_v11 }
  0x54   : > { %1981 = vmatprep.subr.mxu0 %v2439_v60  ;;  %2011 = vmatprep.subr.mxu1 %v2313_v16 }
  0x55   : > { %1982 = vmatpush3.msra.mxu0 %v2439_v60  ;;  %2012 = vmatpush3.msra.mxu1 %v2313_v16 }
  0x56   : > { %1983 = vmatprep.subr.mxu0 %v2458_v6  ;;  %2013 = vmatprep.subr.mxu1 %v2338_v24 }
  0x57   : > { %1984 = vmatpush3.msra.mxu0 %v2458_v6  ;;  %2014 = vmatpush3.msra.mxu1 %v2338_v24 }
  0x58   : > { %1985 = vmatprep.subr.mxu0 %v2477_v30  ;;  %2015 = vmatprep.subr.mxu1 %v2349_v27 }
  0x59   : > { %1986 = vmatpush3.msra.mxu0 %v2477_v30  ;;  %2016 = vmatpush3.msra.mxu1 %v2349_v27 }
  0x5a   : > { %1987 = vmatprep.subr.mxu0 %v2496_v40  ;;  %2017 = vmatprep.subr.mxu1 %v2369_v34 }
  0x5b   : > { %1920 = vmatprep.mubr.f32.mxu0 %v344_v46  ;;  %1988 = vmatpush3.msra.mxu0 %v2496_v40 }
  0x5c   : > { %2018 = vmatpush3.msra.mxu1 %v2369_v34  ;;  %1921 = vmatmul.mubr.f32.gmra.mxu0 %v354_v49 }
  0x5d   : > { %1989 = vmatprep.subr.mxu0 %v2508_v55  ;;  %2019 = vmatprep.subr.mxu1 %v2400_v45 }
  0x5e   : > { %1990 = vmatpush3.msra.mxu0 %v2508_v55  ;;  %2020 = vmatpush3.msra.mxu1 %v2400_v45 }
  0x5f   : > { %1991 = vmatprep.subr.mxu0 %v2518_v0  ;;  %2021 = vmatprep.subr.mxu1 %v2406_v47 }
  0x60   : > { %1992 = vmatpush3.msra.mxu0 %v2518_v0  ;;  %1993 = vmatprep.mubr.f32.mxu0 %v2474_v25 }
  0x61   : > { %2022 = vmatpush3.msra.mxu1 %v2406_v47  ;;  %1958 = vmatprep.mubr.f32.mxu1 %v2565_v14 }
  0x62   : > { %1994 = vmatmul.mubr.f32.vlgmr.msra.gmra.mxu0 %v2484_v32  ;;  %2023 = vmatprep.subr.mxu1 %v2430_v57 }
  0x63   : > { %2037 = vmatprep.subr.mxu0 %v2330_v21  ;;  %1959 = vmatmul.mubr.f32.gmra.mxu1 %v2570_v15 }
  0x64   : > { %2024 = vmatpush3.msra.mxu1 %v2430_v57  ;;  %2038 = vmatpush3.msra.mxu0 %v2330_v21  ;;  %v2780_v21 = vand.u32 4294901760, %v2474_v25 }
  0x65   : > { %2025 = vmatprep.subr.mxu1 %v2461_v8  ;;  %2039 = vmatprep.subr.mxu0 %v2333_v22 }
  0x66   : > { %1996 = vmatprep.mubr.f32.mxu0 %v2580_v17  ;;  %2026 = vmatpush3.msra.mxu1 %v2461_v8 }
  0x67   : > { %2040 = vmatpush3.msra.mxu0 %v2333_v22  ;;  %2027 = vmatprep.subr.mxu1 %v2480_v31  ;;  %v2781_v22 = vand.u32 4294901760, %v2484_v32 }
  0x68   : > { %1997 = vmatmul.mubr.f32.gmra.mxu0 %v2586_v19  ;;  %2041 = vmatprep.subr.mxu0 %v2336_v23 }
  0x69   : > { %2028 = vmatpush3.msra.mxu1 %v2480_v31  ;;  %2042 = vmatpush3.msra.mxu0 %v2336_v23 }
  0x6a   : > { %2029 = vmatprep.subr.mxu1 %v2493_v38  ;;  %2043 = vmatprep.subr.mxu0 %v2347_v26 }
  0x6b   : > { %2030 = vmatpush3.msra.mxu1 %v2493_v38  ;;  %2031 = vmatprep.mubr.f32.mxu1 %v2780_v21 }
  0x6c   : > { %2044 = vmatpush3.msra.mxu0 %v2347_v26  ;;  %2032 = vmatmul.mubr.f32.vlgmr.msra.gmra.mxu1 %v2781_v22 }
  0x6d   : > { %2045 = vmatprep.subr.mxu0 %v2352_v28  ;;  %2075 = vmatprep.subr.mxu1 %v2279_v3 }
  0x6e   : > { %2046 = vmatpush3.msra.mxu0 %v2352_v28  ;;  %2076 = vmatpush3.msra.mxu1 %v2279_v3  ;;  %v219_v3 = vld [vmem:[%s2770_s3] sm:$0xf] }
  0x6f   : > { %2047 = vmatprep.subr.mxu0 %v2378_v39  ;;  %2077 = vmatprep.subr.mxu1 %v2281_v4 }
  0x70   : > { %2034 = vmatprep.mubr.f32.mxu1 %v342_v20  ;;  %2048 = vmatpush3.msra.mxu0 %v2378_v39 }
  0x71   : > { %2078 = vmatpush3.msra.mxu1 %v2281_v4  ;;  %2049 = vmatprep.subr.mxu0 %v2394_v42  ;;  %v1067_v4 = vsel %vm1065_vm0, %v219_v3, 0 }
  0x72   : > { %2035 = vmatmul.mubr.f32.gmra.mxu1 %v352_v29  ;;  %2079 = vmatprep.subr.mxu1 %v2283_v5 }
  0x73   : > { %2050 = vmatpush3.msra.mxu0 %v2394_v42  ;;  %2080 = vmatpush3.msra.mxu1 %v2283_v5  ;;  %v2731_v5 = vand.u32 4294901760, %v1067_v4 }
  0x74   : > { %2051 = vmatprep.subr.mxu0 %v2418_v52  ;;  %2081 = vmatprep.subr.mxu1 %v2294_v9 }
  0x75   : > { %2052 = vmatpush3.msra.mxu0 %v2418_v52  ;;  %2082 = vmatpush3.msra.mxu1 %v2294_v9  ;;  %v2734_v9 = vsub.f32 %v1067_v4, %v2731_v5 }
  0x76   : > { %2053 = vmatprep.subr.mxu0 %v2433_v58  ;;  %2083 = vmatprep.subr.mxu1 %v2296_v10 }
  0x77   : > { %2054 = vmatpush3.msra.mxu0 %v2433_v58  ;;  %2084 = vmatpush3.msra.mxu1 %v2296_v10  ;;  %v2739_v10 = vand.u32 4294901760, %v2734_v9 }
  0x78   : > { %2055 = vmatprep.subr.mxu0 %v2452_v1  ;;  %2085 = vmatprep.subr.mxu1 %v2298_v11 }
  0x79   : > { %2056 = vmatpush3.msra.mxu0 %v2452_v1  ;;  %2086 = vmatpush3.msra.mxu1 %v2298_v11  ;;  %v1209_v11 = vsub.f32 %v2734_v9, %v2739_v10 }
  0x7a   : > { %2057 = vmatprep.subr.mxu0 %v2467_v13  ;;  %2087 = vmatprep.subr.mxu1 %v2313_v16 }
  0x7b   : > { %2058 = vmatpush3.msra.mxu0 %v2467_v13  ;;  %2088 = vmatpush3.msra.mxu1 %v2313_v16  ;;  %v1210_v16 = vand.u32 4294901760, %v1209_v11 }
  0x7c   : > { %2059 = vmatprep.subr.mxu0 %v2490_v37  ;;  %2089 = vmatprep.subr.mxu1 %v2338_v24 }
  0x7d   : > { %2060 = vmatpush3.msra.mxu0 %v2490_v37  ;;  %2090 = vmatpush3.msra.mxu1 %v2338_v24 }
  0x7e   : > { %2061 = vmatprep.subr.mxu0 %v2503_v50  ;;  %2091 = vmatprep.subr.mxu1 %v2349_v27 }
  0x7f   : > { %2062 = vmatpush3.msra.mxu0 %v2503_v50  ;;  %2092 = vmatpush3.msra.mxu1 %v2349_v27 }
  0x80   : > { %2063 = vmatprep.subr.mxu0 %v2515_v63  ;;  %2093 = vmatprep.subr.mxu1 %v2369_v34 }
  0x81   : > { %2064 = vmatpush3.msra.mxu0 %v2515_v63  ;;  %2094 = vmatpush3.msra.mxu1 %v2369_v34 }
  0x82   : > { %2065 = vmatprep.subr.mxu0 %v2531_v18  ;;  %2095 = vmatprep.subr.mxu1 %v2400_v45 }
  0x83   : > { %2066 = vmatpush3.msra.mxu0 %v2531_v18  ;;  %2096 = vmatpush3.msra.mxu1 %v2400_v45 }
  0x84   : > { %2067 = vmatprep.subr.mxu0 %v2538_v48  ;;  %2097 = vmatprep.subr.mxu1 %v2406_v47 }
  0x85   : > { %2068 = vmatpush3.msra.mxu0 %v2538_v48  ;;  %2069 = vmatprep.mubr.f32.mxu0 %v2442_v61 }
  0x86   : > { %2098 = vmatpush3.msra.mxu1 %v2406_v47  ;;  %2070 = vmatmul.mubr.f32.vlgmr.msra.gmra.mxu0 %v2446_v62 }
  0x87   : > { %2099 = vmatprep.subr.mxu1 %v2430_v57  ;;  %2072 = vmatprep.mubr.f32.mxu0 %v2565_v14 }
  0x88   : > { %2100 = vmatpush3.msra.mxu1 %v2430_v57  ;;  %2107 = vmatprep.mubr.f32.mxu1 %v2442_v61 }
  0x89   : > { %2101 = vmatprep.subr.mxu1 %v2461_v8  ;;  %2113 = vmatprep.subr.mxu0 %v2731_v5 }
  0x8a   : > { %2102 = vmatpush3.msra.mxu1 %v2461_v8  ;;  %2073 = vmatmul.mubr.f32.gmra.mxu0 %v2570_v15 }
  0x8b   : > { %2103 = vmatprep.subr.mxu1 %v2480_v31  ;;  %2114 = vmatpush3.msra.mxu0 %v2731_v5 }
  0x8c   : > { %2104 = vmatpush3.msra.mxu1 %v2480_v31  ;;  %2129 = vmatprep.subr.mxu0 %v2734_v9 }
  0x8d   : > { %2105 = vmatprep.subr.mxu1 %v2493_v38 }
  0x8e   : > { %2106 = vmatpush3.msra.mxu1 %v2493_v38 }
  0x8f   : > { %2108 = vmatmul.mubr.f32.vlgmr.msra.gmra.mxu1 %v2446_v62  ;;  %2121 = vmatprep.subr.mxu1 %v1210_v16 }
  0x90   : > { %2110 = vmatprep.mubr.f32.mxu1 %v2565_v14  ;;  %2122 = vmatpush3.msra.mxu1 %v1210_v16  ;;  %v1039_v16 = vstv %s220_s16 }
  0x91   : > { %2137 = vmatprep.subr.mxu1 %v2731_v5 }
  0x93   : > { %2111 = vmatmul.mubr.f32.gmra.mxu1 %v2570_v15 }
  0xff   : > { %v1919_v23 = vpop.f32.mrf.mxu0 }
 0x101   : > { %v326_v24 = vpop.f32.mrf.mxu0 }
 0x107   : > { %v1957_v28 = vpop.f32.mrf.mxu1 }
 0x108   : > { %v514_v61 = vadd.f32 %v1957_v28, %v1919_v23 }
 0x109   : > { %v507_v39 = vpop.f32.mrf.mxu1 }
 0x10a   : > { %v508_v6 = vadd.f32 %v507_v39, %v326_v24 }
 0x11c   : > { %v1922_v26 = vpop.f32.mrf.mxu0 }
 0x11e   : > { %v346_v27 = vpop.f32.mrf.mxu0 }
 0x122   : > { %v1995_v34 = vpop.f32.mrf.mxu0 }
 0x123   : > { %v1960_v42 = vpop.f32.mrf.mxu1  ;;  %v637_v8 = vadd.f32 %v1995_v34, %v514_v61 }
 0x124   : > { %v629_v45 = vpop.f32.mrf.mxu0  ;;  %v526_v13 = vadd.f32 %v1960_v42, %v1922_v26 }
 0x125   : > { %v519_v47 = vpop.f32.mrf.mxu1  ;;  %v630_v25 = vadd.f32 %v629_v45, %v508_v6 }
 0x126   : > { %v520_v30 = vadd.f32 %v519_v47, %v346_v27 }
 0x128   : > { %v1998_v52 = vpop.f32.mrf.mxu0 }
 0x129   : > { %v651_v48 = vadd.f32 %v1998_v52, %v526_v13 }
 0x12a   : > { %v643_v57 = vpop.f32.mrf.mxu0 }
 0x12b   : > { %v644_v55 = vadd.f32 %v643_v57, %v520_v30 }
 0x12c   : > { %v2033_v53 = vpop.f32.mrf.mxu1 }
 0x12d   : > { %v748_v31 = vadd.f32 %v2033_v53, %v637_v8 }
 0x12e   : > { %v739_v58 = vpop.f32.mrf.mxu1 }
 0x12f   : > { %v740_v38 = vadd.f32 %v739_v58, %v630_v25 }
 0x132   : > { %v2036_v62 = vpop.f32.mrf.mxu1 }
 0x133   : > { %v764_v35 = vadd.f32 %v2036_v62, %v651_v48 }
 0x134   : > { %v755_v32 = vpop.f32.mrf.mxu1 }
 0x135   : > { %v756_v41 = vadd.f32 %v755_v32, %v644_v55 }
 0x146   : > { %v2071_v60 = vpop.f32.mrf.mxu0 }
 0x147   : > { %v889_v40 = vadd.f32 %v2071_v60, %v748_v31 }
 0x148   : > { %v882_v1 = vpop.f32.mrf.mxu0 }
 0x149   : > { %v883_v63 = vadd.f32 %v882_v1, %v740_v38 }
 0x14a   : > { %v2074_v37 = vpop.f32.mrf.mxu0 }
 0x14b   : > { %v901_v2 = vadd.f32 %v2074_v37, %v764_v35 }
 0x14c   : > { %v894_v18 = vpop.f32.mrf.mxu0 }
 0x14d   : > { %v895_v14 = vadd.f32 %v894_v18, %v756_v41 }
 0x14f   : > { %v2109_v50 = vpop.f32.mrf.mxu1 }
 0x150   : > { %v994_v0 = vadd.f32 %v2109_v50, %v889_v40 }
 0x151   : > { %v987_v44 = vpop.f32.mrf.mxu1 }
 0x152   : > { %v1011_v59 = vmul.f32 %v1009_v51, %v994_v0  ;;  %v988_v56 = vadd.f32 %v987_v44, %v883_v63  ;;  %v1041_v26 = vmul.f32 %v1039_v16, %v994_v0 }
 0x153   : > { %v2112_v7 = vpop.f32.mrf.mxu1 }
 0x154   : > { %v1016_v15 = vsub.f32 %v1011_v59, %v1014_v36  ;;  %v1010_v17 = vmul.f32 %v1009_v51, %v988_v56  ;;  %v1006_v19 = vadd.f32 %v2112_v7, %v901_v2  ;;  %v1040_v28 = vmul.f32 %v1039_v16, %v988_v56 }
 0x155   : > { %v999_v20 = vpop.f32.mrf.mxu1  ;;  %v1045_v47 = vsub.f32 1.0, %v1041_v26 }
 0x156   : > { %v1020_v29 = vmul.f32 0.5, %v1016_v15  ;;  %v1015_v33 = vsub.f32 %v1010_v17, %v1014_v36  ;;  %v1000_v43 = vadd.f32 %v999_v20, %v895_v14  ;;  %v1013_v46 = vmul.f32 %v1009_v51, %v1006_v19 }
 0x157   : > { %v1044_v57 = vsub.f32 1.0, %v1040_v28  ;;  %v1043_v60 = vmul.f32 %v1039_v16, %v1006_v19 }
 0x158   : > { %2180 = vtanh.f32 %v1020_v29  ;;  %v1019_v49 = vmul.f32 0.5, %v1015_v33  ;;  %v1012_v21 = vmul.f32 %v1009_v51, %v1000_v43  ;;  %v1018_v22 = vsub.f32 %v1013_v46, %v1014_v36 }
 0x159   : > { %v1042_v6 = vmul.f32 %v1039_v16, %v1000_v43  ;;  %v1047_v37 = vsub.f32 1.0, %v1043_v60 }
 0x15a   : > { %2182 = vtanh.f32 %v1019_v49  ;;  %v1017_v3 = vsub.f32 %v1012_v21, %v1014_v36  ;;  %v1022_v4 = vmul.f32 0.5, %v1018_v22 }
 0x15b   : > { %v1046_v48 = vsub.f32 1.0, %v1042_v6 }
 0x15c   : > { %v1021_v11 = vmul.f32 0.5, %v1017_v3  ;;  %2184 = vtanh.f32 %v1022_v4 }
 0x15e   : > { %2186 = vtanh.f32 %v1021_v11 }
 0x165   : > { %v2181_v23 = vpop.eup %2180 }
 0x166   : > { %v1028_v24 = vadd.f32 1.0, %v2181_v23 }
 0x167   : > { %v2183_v27 = vpop.eup %2182 }
 0x168   : > { %v1032_v34 = vmul.f32 0.5, %v1028_v24  ;;  %v1027_v39 = vadd.f32 1.0, %v2183_v27 }
 0x169   : > { %v2185_v42 = vpop.eup %2184 }
 0x16a   : > { %v1036_v45 = vmul.f32 2.0, %v1032_v34  ;;  %v1031_v52 = vmul.f32 0.5, %v1027_v39  ;;  %v1030_v58 = vadd.f32 1.0, %v2185_v42 }
 0x16b   : > { %v2187_v53 = vpop.eup %2186 }
 0x16c   : > { %v1049_v61 = vmul.f32 %v1045_v47, %v1036_v45  ;;  %v1035_v62 = vmul.f32 2.0, %v1031_v52  ;;  %v1029_v1 = vadd.f32 1.0, %v2187_v53  ;;  %v1034_v8 = vmul.f32 0.5, %v1030_v58 }
 0x16e   : > { %v1057_v13 = vsel %vm1052_vm1, %v1049_v61, 0  ;;  %v1048_v25 = vmul.f32 %v1044_v57, %v1035_v62  ;;  %v1033_v30 = vmul.f32 0.5, %v1029_v1  ;;  %v1038_v32 = vmul.f32 2.0, %v1034_v8 }
 0x16f   : > { %v1145_v31 = vand.u32 4294901760, %v1057_v13 }
 0x170   : > { %v1054_v38 = vsel %vm1052_vm1, %v1048_v25, 0  ;;  %v1037_v40 = vmul.f32 2.0, %v1033_v30  ;;  %v1051_v51 = vmul.f32 %v1047_v37, %v1038_v32 }
 0x171   : > { %v1146_v50 = vsub.f32 %v1057_v13, %v1145_v31  ;;  %v1135_v55 = vand.u32 4294901760, %v1054_v38 }
 0x172   : > { %v1050_v63 = vmul.f32 %v1046_v48, %v1037_v40  ;;  %v1063_v35 = vsel %vm1052_vm1, %v1051_v51, 0  ;;  %v2782_v51 = vld [vmem:[#allocation5_spill] sm:$0xff] }
 0x173   : > { %v1147_v0 = vand.u32 4294901760, %v1146_v50  ;;  %2123 = vmatprep.mubr.f32.mxu1 %v1135_v55  ;;  %v1136_v18 = vsub.f32 %v1054_v38, %v1135_v55  ;;  %v1165_v44 = vand.u32 4294901760, %v1063_v35 }
 0x174   : > { %v1060_v36 = vsel %vm1052_vm1, %v1050_v63, 0  ;;  %2124 = vmatmul.mubr.f32.vlgmr.msra.gmra.mxu1 %v1145_v31 }
 0x175   : > { %v1155_v41 = vand.u32 4294901760, %v1060_v36  ;;  %v1137_v59 = vand.u32 4294901760, %v1136_v18  ;;  %2138 = vmatpush3.msra.mxu1 %v2731_v5  ;;  %v1148_v56 = vsub.f32 %v1146_v50, %v1147_v0  ;;  %v1166_v2 = vsub.f32 %v1063_v35, %v1165_v44  ;;  %v2783_v35 = vld [vmem:[#allocation6_spill] sm:$0xff] }
 0x176   : > { %2153 = vmatprep.subr.mxu1 %v2731_v5 }
 0x177   : > { %2126 = vmatprep.mubr.f32.mxu1 %v1155_v41  ;;  %v1138_v7 = vsub.f32 %v1136_v18, %v1137_v59  ;;  %v1156_v14 = vsub.f32 %v1060_v36, %v1155_v41  ;;  %v1167_v15 = vand.u32 4294901760, %v1166_v2  ;;  %v1149_v20 = vand.u32 4294901760, %v1148_v56 }
 0x178   : > { %2127 = vmatmul.mubr.f32.gmra.mxu1 %v1165_v44 }
 0x179   : > { %2139 = vmatprep.mubr.f32.mxu1 %v1137_v59  ;;  %v1139_v17 = vand.u32 4294901760, %v1138_v7  ;;  %v1157_v19 = vand.u32 4294901760, %v1156_v14  ;;  %v1168_v29 = vsub.f32 %v1166_v2, %v1167_v15 }
 0x17b   : > { %2115 = vmatprep.mubr.f32.mxu0 %v1139_v17  ;;  %v1158_v33 = vsub.f32 %v1156_v14, %v1157_v19  ;;  %v1169_v46 = vand.u32 4294901760, %v1168_v29 }
 0x17c   : > { %2116 = vmatmul.mubr.f32.vlgmr.msra.gmra.mxu0 %v1149_v20  ;;  %2140 = vmatmul.mubr.f32.vlgmr.msra.gmra.mxu1 %v1147_v0 }
 0x17d   : > { %2130 = vmatpush3.msra.mxu0 %v2734_v9  ;;  %2142 = vmatprep.mubr.f32.mxu1 %v1157_v19  ;;  %v1159_v43 = vand.u32 4294901760, %v1158_v33 }
 0x17e   : > { %2145 = vmatprep.subr.mxu0 %v2739_v10  ;;  %2154 = vmatpush3.msra.mxu1 %v2731_v5 }
 0x17f   : > { %2118 = vmatprep.mubr.f32.mxu0 %v1159_v43 }
 0x180   : > { %2119 = vmatmul.mubr.f32.gmra.mxu0 %v1169_v46  ;;  %2143 = vmatmul.mubr.f32.gmra.mxu1 %v1167_v15 }
 0x181   : > { %2131 = vmatprep.mubr.f32.mxu0 %v1136_v18  ;;  %2155 = vmatprep.mubr.f32.mxu1 %v1135_v55 }
 0x184   : > { %2132 = vmatmul.mubr.f32.vlgmr.msra.gmra.mxu0 %v1146_v50  ;;  %2156 = vmatmul.mubr.f32.vlgmr.msra.gmra.mxu1 %v1145_v31 }
 0x185   : > { %2146 = vmatpush3.msra.mxu0 %v2739_v10  ;;  %2134 = vmatprep.mubr.f32.mxu0 %v1156_v14 }
 0x186   : > { %2158 = vmatprep.mubr.f32.mxu1 %v1155_v41 }
 0x188   : > { %2135 = vmatmul.mubr.f32.gmra.mxu0 %v1166_v2  ;;  %2159 = vmatmul.mubr.f32.gmra.mxu1 %v1165_v44 }
 0x189   : > { %2147 = vmatprep.mubr.f32.mxu0 %v1135_v55 }
 0x18c   : > { %2148 = vmatmul.mubr.f32.vlgmr.msra.gmra.mxu0 %v1145_v31 }
 0x18d   : > { %2150 = vmatprep.mubr.f32.mxu0 %v1155_v41 }
 0x190   : > { %2151 = vmatmul.mubr.f32.gmra.mxu0 %v1165_v44 }
 0x234   : > { %v2125_v9 = vpop.f32.mrf.mxu1 }
 0x236   : > { %v1247_v49 = vpop.f32.mrf.mxu1 }
 0x238   : > { %v2128_v5 = vpop.f32.mrf.mxu1 }
 0x23a   : > { %v1259_v21 = vpop.f32.mrf.mxu1 }
 0x23c   : > { %v2117_v22 = vpop.f32.mrf.mxu0  ;;  %v2141_v3 = vpop.f32.mrf.mxu1 }
 0x23d   : > { %v1254_v27 = vadd.f32 %v2125_v9, %v2117_v22 }
 0x23e   : > { %v1141_v4 = vpop.f32.mrf.mxu0  ;;  %v1434_v11 = vpop.f32.mrf.mxu1 }
 0x23f   : > { %v1248_v34 = vadd.f32 %v1247_v49, %v1141_v4 }
 0x240   : > { %v2120_v16 = vpop.f32.mrf.mxu0  ;;  %v2144_v23 = vpop.f32.mrf.mxu1 }
 0x241   : > { %v1266_v47 = vadd.f32 %v2128_v5, %v2120_v16 }
 0x242   : > { %v1161_v24 = vpop.f32.mrf.mxu0  ;;  %v1450_v10 = vpop.f32.mrf.mxu1 }
 0x243   : > { %v1260_v57 = vadd.f32 %v1259_v21, %v1161_v24 }
 0x244   : > { %v2133_v26 = vpop.f32.mrf.mxu0  ;;  %v2157_v42 = vpop.f32.mrf.mxu1 }
 0x245   : > { %v1347_v39 = vadd.f32 %v2133_v26, %v1254_v27 }
 0x246   : > { %v1339_v28 = vpop.f32.mrf.mxu0  ;;  %v1622_v61 = vpop.f32.mrf.mxu1 }
 0x247   : > { %v1340_v52 = vadd.f32 %v1339_v28, %v1248_v34  ;;  %v1443_v60 = vadd.f32 %v2141_v3, %v1347_v39 }
 0x248   : > { %v2136_v45 = vpop.f32.mrf.mxu0  ;;  %v2160_v31 = vpop.f32.mrf.mxu1 }
 0x249   : > { %v1361_v58 = vadd.f32 %v2136_v45, %v1266_v47  ;;  %v1435_v8 = vadd.f32 %v1434_v11, %v1340_v52 }
 0x24a   : > { %v1353_v53 = vpop.f32.mrf.mxu0  ;;  %v1634_v0 = vpop.f32.mrf.mxu1 }
 0x24b   : > { %v1354_v1 = vadd.f32 %v1353_v53, %v1260_v57  ;;  %v1459_v30 = vadd.f32 %v2144_v23, %v1361_v58 }
 0x24c   : > { %v2149_v62 = vpop.f32.mrf.mxu0 }
 0x24d   : > { %v1539_v6 = vadd.f32 %v2149_v62, %v1443_v60  ;;  %v1451_v48 = vadd.f32 %v1450_v10, %v1354_v1 }
 0x24e   : > { %v1532_v13 = vpop.f32.mrf.mxu0 }
 0x24f   : > { %v1533_v25 = vadd.f32 %v1532_v13, %v1435_v8  ;;  %v1629_v32 = vadd.f32 %v2157_v42, %v1539_v6 }
 0x250   : > { %v2152_v37 = vpop.f32.mrf.mxu0 }
 0x251   : > { %v1623_v38 = vadd.f32 %v1622_v61, %v1533_v25  ;;  %v1551_v40 = vadd.f32 %v2152_v37, %v1459_v30  ;;  %v1645_v18 = vadd.f32 %v1629_v32, %v2783_v35 }
 0x252   : > { %v1544_v50 = vpop.f32.mrf.mxu0 }
 0x253   : > { %v1644_v55 = vadd.f32 %v1623_v38, %v2782_v51  ;;  %v1545_v63 = vadd.f32 %v1544_v50, %v1451_v48  ;;  %v1641_v36 = vadd.f32 %v2160_v31, %v1551_v40  ;;  %1649 = vst [vmem:[%s213_s19 + $0x8] sm:$0xff] %v1645_v18 }
 0x255   : > { %1648 = vst [vmem:[%s213_s19] sm:$0xff] %v1644_v55  ;;  %v1635_v44 = vadd.f32 %v1634_v0, %v1545_v63  ;;  %v1647_v59 = vadd.f32 %v1641_v36, %v2559_v54 }
 0x257   : > { %v1646_v41 = vadd.f32 %v1635_v44, %v2555_v12  ;;  %1651 = vst [vmem:[%s213_s19 + $0x18] sm:$0xff] %v1647_v59 }
 0x259   : > { %1650 = vst [vmem:[%s213_s19 + $0x10] sm:$0xff] %v1646_v41 }
 0x25a PF: > { %s15_s15 = sadd.s32 1, %s2213_s15  }
 0x25b   : > { %p12_p1 = scmp.ge.s32.totalorder %s15_s15, 4  }
 0x25d   :  { %14 = sbr.rel (!%p12_p1) target bundleno = 1 (0x1), region = 71 }
 0x262   :  { %1674 = vsyncpa [#allocation3], 1 }
 0x263   :  { %1676 = vsyncpa [#allocation3 + $0x1], 1 }

</bundles_post_ra>
